<compile_context>
chip_gen: v6e
topology: v6e:2x2x1
jax: 0.10.0
libtpu: 0.0.40
codegen_flags: <defaults>
</compile_context>

<pallas_src>
import math

import jax
import jax.numpy as jnp
from jax.experimental import pallas as pl
from jax.experimental.pallas import tpu as pltpu


def _round_up(x: int, m: int) -> int:
    return (x + m - 1) // m * m


# ---------------------------------------------------------------------------
# Hot-path kernel: out[i, j] = bias[j] + sum_k x[i, k] @ w[j, k]^T
# ---------------------------------------------------------------------------
def _classifier_kernel(x_ref, w_ref, b_ref, o_ref):
    k = pl.program_id(2)

    # Output block is VMEM-resident across the k axis (its index_map is
    # constant over k), so it doubles as the f32 accumulator; initializing it
    # with the broadcast bias folds the bias add into the init for free.
    @pl.when(k == 0)
    def _init():
        o_ref[...] = jnp.broadcast_to(b_ref[...], o_ref.shape)

    # (tm, tk) bf16 x (tn, tk) bf16, contracting the LAST axis of both, so the
    # weight never needs an (E, C) transpose copy in HBM.  f32 accumulation.
    o_ref[...] += jax.lax.dot_general(
        x_ref[...], w_ref[...],
        dimension_numbers=(((1,), (1,)), ((), ())),
        preferred_element_type=jnp.float32,
    )


# ---------------------------------------------------------------------------
# One-time parameter transform (weight/bias are module parameters, so this is
# cacheable across forward calls — it is NOT part of the per-call hot path).
# ---------------------------------------------------------------------------
def prepare_classifier_params(weight, bias, norm_flag: bool):
    C, E = weight.shape
    tn = min(512, _round_up(C, 128))
    tk = min(1024, _round_up(E, 128))
    Cp, Ep = _round_up(C, tn), _round_up(E, tk)

    w = weight.astype(jnp.float32)
    if norm_flag:
        # l2_norm(weight, axis=0): normalize every embedding column over the
        # class axis (exact, no eps — matches the PyTorch reference).
        w = w / jnp.linalg.norm(w, ord=2, axis=0, keepdims=True)
    w_p = jnp.pad(w.astype(jnp.bfloat16), ((0, Cp - C), (0, Ep - E)))
    b_p = jnp.pad(bias.astype(jnp.float32), (0, Cp - C)).reshape(1, Cp)
    return w_p, b_p


# ---------------------------------------------------------------------------
# Per-call hot path: single tiled MXU matmul over the prepared (bf16) weight.
# ---------------------------------------------------------------------------
def classifier_matmul(x, w_prepared, b_prepared, num_classes: int):
    B, E = x.shape
    Cp, Ep = w_prepared.shape
    assert E <= Ep and b_prepared.shape == (1, Cp)

    tm = min(512, _round_up(B, 8))
    Bp = _round_up(B, tm)
    # Cp / Ep are 128-multiples by construction, so these are lane-aligned.
    tn = math.gcd(Cp, 512)
    tk = math.gcd(Ep, 1024)

    x_p = jnp.pad(x.astype(jnp.bfloat16), ((0, Bp - B), (0, Ep - E)))

    grid = (Bp // tm, Cp // tn, Ep // tk)

    out = pl.pallas_call(
        _classifier_kernel,
        out_shape=jax.ShapeDtypeStruct((Bp, Cp), jnp.float32),
        grid_spec=pltpu.PrefetchScalarGridSpec(
            num_scalar_prefetch=0,
            grid=grid,
            in_specs=[
                pl.BlockSpec((tm, tk), lambda i, j, k: (i, k)),   # x   (B, E)
                pl.BlockSpec((tn, tk), lambda i, j, k: (j, k)),   # W   (C, E), no transpose
                pl.BlockSpec((1, tn), lambda i, j, k: (0, j)),    # bias (1, C)
            ],
            out_specs=pl.BlockSpec((tm, tn), lambda i, j, k: (i, j)),
        ),
        compiler_params=pltpu.CompilerParams(
            dimension_semantics=("parallel", "parallel", "arbitrary"),
            vmem_limit_bytes=32 * 1024 * 1024,
        ),
        cost_estimate=pl.CostEstimate(
            flops=2 * Bp * Cp * Ep,
            transcendentals=0,
            # Real streamed traffic: x re-read per j tile, weight re-read per
            # i tile (both bf16), f32 output written once, bias per i tile.
            bytes_accessed=(2 * Bp * Ep * (Cp // tn)
                            + 2 * Cp * Ep * (Bp // tm)
                            + 4 * Bp * Cp
                            + 4 * Cp * (Bp // tm)),
        ),
    )(x_p, w_prepared, b_prepared)

    return out[:B, :num_classes]


def classifier_forward(x, weight, bias, norm_flag: bool):
    """out = x @ (l2_norm(W, axis=0) if norm_flag else W).T + b."""
    num_classes = weight.shape[0]
    # TODO(synk): in a real deployment cache (w_p, b_p) per norm_flag across
    # calls (weight is a module parameter); recomputed here to keep the script
    # self-contained and purely functional.
    w_p, b_p = prepare_classifier_params(weight, bias, bool(norm_flag))
    return classifier_matmul(x, w_p, b_p, num_classes)


# ---------------------------------------------------------------------------
# References
# ---------------------------------------------------------------------------
def _reference_f32(x, weight, bias, norm_flag):
    w = weight
    if norm_flag:
        w = w / jnp.linalg.norm(w, ord=2, axis=0, keepdims=True)
    return x @ w.T + bias


def _reference_bf16(x, weight, bias, norm_flag):
    # Same bf16 input rounding as the kernel, f32 accumulation.
    w = weight.astype(jnp.float32)
    if norm_flag:
        w = w / jnp.linalg.norm(w, ord=2, axis=0, keepdims=True)
    xb = x.astype(jnp.bfloat16).astype(jnp.float32)
    wb = w.astype(jnp.bfloat16).astype(jnp.float32)
    return jnp.dot(xb, wb.T, preferred_element_type=jnp.float32) + bias


if __name__ == "__main__":
    # Module defaults: embedding_size=512, num_classes=2; small batch.
    batch, embedding_size, num_classes = 8, 512, 2

    key = jax.random.PRNGKey(0)
    kx, kw = jax.random.split(key)

    x = jax.random.normal(kx, (batch, embedding_size), dtype=jnp.float32)
    # Mirror the PyTorch init: weight ~ N(0, 0.01), bias = 0.
    weight = 0.01 * jax.random.normal(
        kw, (num_classes, embedding_size), dtype=jnp.float32)
    bias = jnp.zeros((num_classes,), dtype=jnp.float32)

    for norm_flag in (True, False):
        out = jax.block_until_ready(classifier_forward(x, weight, bias, norm_flag))
        assert out.shape == (batch, num_classes)

        ref_b = _reference_bf16(x, weight, bias, norm_flag)
        ref_f = _reference_f32(x, weight, bias, norm_flag)
        # Tight check against the bf16-input / f32-accumulation reference.
        assert jnp.allclose(out, ref_b, atol=2e-3, rtol=2e-3), (
            f"bf16-matched mismatch for norm_flag={norm_flag}")
        # Loose check against the pure-f32 reference (bf16 input rounding).
        assert jnp.allclose(out, ref_f, atol=5e-2, rtol=5e-2), (
            f"f32 reference mismatch for norm_flag={norm_flag}")

    print("KERNEL_OK")
</pallas_src>

<mosaic_0001>
module attributes {stable_mosaic.version = 11 : i64} {
  func.func @_classifier_kernel(%arg0: i32, %arg1: i32, %arg2: i32, %arg3: memref<8x512xbf16, #tpu.memory_space<vmem>>, %arg4: memref<128x512xbf16, #tpu.memory_space<vmem>>, %arg5: memref<1x128xf32, #tpu.memory_space<vmem>>, %arg6: memref<8x128xf32, #tpu.memory_space<vmem>>) attributes {dimension_semantics = [#tpu.dimension_semantics<parallel>, #tpu.dimension_semantics<parallel>, #tpu.dimension_semantics<arbitrary>], iteration_bounds = array<i64: 1, 1, 1>, scalar_prefetch = 0 : i64, scratch_operands = 0 : i64, tpu.core_type = #tpu.core_type<tc>, window_params = [{transform_indices = @transform_0, window_bounds = array<i64: 8, 512>}, {transform_indices = @transform_1, window_bounds = array<i64: 128, 512>}, {transform_indices = @transform_2, window_bounds = array<i64: 1, 128>}, {transform_indices = @transform_3, window_bounds = array<i64: 8, 128>}]} {
    %c0_i32 = arith.constant 0 : i32
    %0 = arith.cmpi eq, %arg2, %c0_i32 : i32
    %1 = arith.extui %0 : i1 to i32
    %c0_i32_0 = arith.constant 0 : i32
    %2 = arith.cmpi ne, %1, %c0_i32_0 : i32
    scf.if %2 {
      %c0_8 = arith.constant 0 : index
      %c0_9 = arith.constant 0 : index
      %9 = vector.load %arg5[%c0_8, %c0_9] : memref<1x128xf32, #tpu.memory_space<vmem>>, vector<1x128xf32>
      %10 = vector.shape_cast %9 : vector<1x128xf32> to vector<1x128xf32>
      %11 = vector.broadcast %10 : vector<1x128xf32> to vector<8x128xf32>
      %c0_10 = arith.constant 0 : index
      %c0_11 = arith.constant 0 : index
      %12 = vector.load %arg6[%c0_10, %c0_11] : memref<8x128xf32, #tpu.memory_space<vmem>>, vector<8x128xf32>
      tpu.vector_store %arg6[%c0_10, %c0_11], %11 {strides = array<i32>} : memref<8x128xf32, #tpu.memory_space<vmem>>, vector<8x128xf32>,
    } else {
    }
    %c0 = arith.constant 0 : index
    %c0_1 = arith.constant 0 : index
    %3 = vector.load %arg6[%c0, %c0_1] : memref<8x128xf32, #tpu.memory_space<vmem>>, vector<8x128xf32>
    %c0_2 = arith.constant 0 : index
    %c0_3 = arith.constant 0 : index
    %4 = vector.load %arg3[%c0_2, %c0_3] : memref<8x512xbf16, #tpu.memory_space<vmem>>, vector<8x512xbf16>
    %c0_4 = arith.constant 0 : index
    %c0_5 = arith.constant 0 : index
    %5 = vector.load %arg4[%c0_4, %c0_5] : memref<128x512xbf16, #tpu.memory_space<vmem>>, vector<128x512xbf16>
    %cst = arith.constant dense<0.000000e+00> : vector<8x128xf32>
    %6 = tpu.matmul %4, %5, %cst {dimension_numbers = #tpu.dot_dimension_numbers<[1], [1], [0], [0], [0, 0, 1, 0], [], []>} : vector<8x512xbf16>, vector<128x512xbf16>, vector<8x128xf32> -> vector<8x128xf32>
    %7 = arith.addf %3, %6 : vector<8x128xf32>
    %c0_6 = arith.constant 0 : index
    %c0_7 = arith.constant 0 : index
    %8 = vector.load %arg6[%c0_6, %c0_7] : memref<8x128xf32, #tpu.memory_space<vmem>>, vector<8x128xf32>
    tpu.vector_store %arg6[%c0_6, %c0_7], %7 {strides = array<i32>} : memref<8x128xf32, #tpu.memory_space<vmem>>, vector<8x128xf32>,
    return
  }
  func.func @transform_0(%arg0: i32, %arg1: i32, %arg2: i32) -> (i32, i32) {
    %c0_i32 = arith.constant 0 : i32
    return %arg0, %arg2 : i32, i32
  }
  func.func @transform_1(%arg0: i32, %arg1: i32, %arg2: i32) -> (i32, i32) {
    %c0_i32 = arith.constant 0 : i32
    return %arg1, %arg2 : i32, i32
  }
  func.func @transform_2(%arg0: i32, %arg1: i32, %arg2: i32) -> (i32, i32) {
    %c0_i32 = arith.constant 0 : i32
    %c0_i32_0 = arith.constant 0 : i32
    return %c0_i32, %arg1 : i32, i32
  }
  func.func @transform_3(%arg0: i32, %arg1: i32, %arg2: i32) -> (i32, i32) {
    %c0_i32 = arith.constant 0 : i32
    return %arg0, %arg1 : i32, i32
  }
}

</mosaic_0001>

<bundles_post_ra>
// kernel: tpu_custom_call.1
= control target key start
LH: loop header
LB: loop body
LE: loop exit
PB: predicated region body
PF: predicated region fallthrough
CT: control target
= control target key end

     0   :  { %8 = vsyncpa [#allocation3], 0  ;;  %s558_s0 = inlined_call_operand.hbm [shape: bf16[8,512], index: 0, kind: input, shape index: {}]   ;;  %s559_s1 = inlined_call_operand.hbm [shape: bf16[128,512], index: 1, kind: input, shape index: {}]   ;;  %s560_s2 = inlined_call_operand.vmem [shape: f32[1,128], index: 2, kind: input, shape index: {}]   ;;  %s561_s3 = inlined_call_operand.hbm [shape: f32[8,128], index: 3, kind: output, shape index: {}]  }
   0x1   :  { %9 = vsyncpa [#allocation6], 0 }
   0x2   :  { %10 = vsyncpa [#allocation4], 0  ;;  %s521_s12 = smov [#allocation2]   ;;  %s522_s14 = smov [#allocation5]  }
   0x3   :  { %s17_s13 = sshll.u32 %s521_s12, 4  ;;  %s26_s15 = sshll.u32 %s522_s14, 4  ;;  %s18_s13 = int_to_ptr.vmem [resolvable:$true] %s17_s13  ;;  %s27_s15 = int_to_ptr.vmem [resolvable:$true] %s26_s15 }
   0x4   :  { %s463_s16 = scalar_lea.vmem %s18_s13, 256  ;;  %p468_p1 = scmp.lt.s32.totalorder %s18_s13, %s18_s13 }
   0x5   :  { %p464_p0 = scmp.ne.s32.totalorder %s18_s13, %s463_s16  ;;  %p469_p2 = scmp.lt.s32.totalorder %s463_s16, %s463_s16 }
   0x7   :  { %p470_p3 = por %p469_p2, %p468_p1 }
   0x9   :  { %p471_p4 = pnand %p470_p3, %p464_p0 }
   0xb   :  { %474 = shalt.err (!%p471_p4)
}
   0xc   :  { %20 = dma.hbm_to_vmem [thread:$0]  %s558_s0, 256, %s18_s13, [#allocation3]  }
   0xd   :  { %s483_s19 = scalar_lea.vmem %s27_s15, 4096  ;;  %p488_p6 = scmp.lt.s32.totalorder %s27_s15, %s27_s15 }
   0xe   :  { %p484_p5 = scmp.ne.s32.totalorder %s27_s15, %s483_s19  ;;  %p489_p7 = scmp.lt.s32.totalorder %s483_s19, %s483_s19 }
  0x10   :  { %p490_p8 = por %p489_p7, %p488_p6 }
  0x12   :  { %p491_p9 = pnand %p490_p8, %p484_p5 }
  0x14   :  { %494 = shalt.err (!%p491_p9)
}
  0x15   :  { %s523_s20 = smov 256   ;;  %s524_s21 = smov 16  }
  0x16   :  { %32 = dma.hbm_to_vmem [thread:$0]  %s559_s1, 4096, %s27_s15, [#allocation6], %s523_s20, %s523_s20, %s524_s21  }
  0x17   :  { %515 = dma.done.wait [#allocation3], 256  }
  0x18   :  { %516 = vsyncadd [#allocation3], 4294967040 }
  0x19   :  { %517 = dma.done.wait [#allocation6], 4096  }
  0x1a   :  { %518 = vsyncadd [#allocation6], 4294963200  ;;  %v403_v0 = vld [vmem:[#allocation5 + $0xe4] ss:$16 sps:$4 sm:$0xff]   ;;  %v405_v1 = vld [vmem:[#allocation5 + $0xec] ss:$16 sps:$4 sm:$0xff]  }
  0x1b   :  { %263 = vmatprep.subr.bf16.mxu0 %v403_v0  ;;  %v407_v2 = vld [vmem:[#allocation5 + $0xe0] ss:$16 sps:$4 sm:$0xff]   ;;  %v408_v3 = vld [vmem:[#allocation5 + $0xe8] ss:$16 sps:$4 sm:$0xff]   ;;  %303 = vmatprep.subr.bf16.mxu1 %v405_v1  ;;  %v409_v4 = vld [vmem:[#allocation5 + $0xc4] ss:$16 sps:$4 sm:$0xff]  }
  0x1c   :  { %264 = vmatpush1.bf16.xpose.msra.mxu0 %v407_v2  ;;  %304 = vmatpush1.bf16.xpose.msra.mxu1 %v408_v3  ;;  %v411_v5 = vld [vmem:[#allocation5 + $0xcc] ss:$16 sps:$4 sm:$0xff]   ;;  %v413_v6 = vld [vmem:[#allocation5 + $0xc0] ss:$16 sps:$4 sm:$0xff]   ;;  %v414_v7 = vld [vmem:[#allocation5 + $0xc8] ss:$16 sps:$4 sm:$0xff]  }
  0x1d   :  { %265 = vmatprep.subr.bf16.mxu0 %v409_v4  ;;  %305 = vmatprep.subr.bf16.mxu1 %v411_v5  ;;  %v415_v8 = vld [vmem:[#allocation5 + $0xa4] ss:$16 sps:$4 sm:$0xff]   ;;  %v417_v9 = vld [vmem:[#allocation5 + $0xac] ss:$16 sps:$4 sm:$0xff]   ;;  %v419_v10 = vld [vmem:[#allocation5 + $0xa0] ss:$16 sps:$4 sm:$0xff]  }
  0x1e   :  { %v420_v11 = vld [vmem:[#allocation5 + $0xa8] ss:$16 sps:$4 sm:$0xff]   ;;  %v421_v12 = vld [vmem:[#allocation5 + $0x84] ss:$16 sps:$4 sm:$0xff]   ;;  %v423_v13 = vld [vmem:[#allocation5 + $0x8c] ss:$16 sps:$4 sm:$0xff]  }
  0x1f   :  { %v55_v14 = vld [vmem:[#allocation2] sm:$0xff]  ;;  %v56_v15 = vld [vmem:[#allocation2 + $0x8] sm:$0xff]  ;;  %s525_s24 = smov [#allocation7]  }
  0x20   :  { %v363_v16 = vcombine.high %v55_v14, %v55_v14  ;;  %v365_v17 = vcombine.high %v56_v15, %v56_v15  ;;  %v425_v18 = vld [vmem:[#allocation5 + $0x80] ss:$16 sps:$4 sm:$0xff]   ;;  %v426_v19 = vld [vmem:[#allocation5 + $0x88] ss:$16 sps:$4 sm:$0xff]   ;;  %v427_v20 = vld [vmem:[#allocation5 + $0x64] ss:$16 sps:$4 sm:$0xff]   ;;  %v362_v36 = vcombine.low %v55_v14, %v55_v14  ;;  %v364_v37 = vcombine.low %v56_v15, %v56_v15 }
  0x21   :  { %v429_v21 = vld [vmem:[#allocation5 + $0x6c] ss:$16 sps:$4 sm:$0xff]   ;;  %v431_v22 = vld [vmem:[#allocation5 + $0x60] ss:$16 sps:$4 sm:$0xff]   ;;  %v432_v23 = vld [vmem:[#allocation5 + $0x68] ss:$16 sps:$4 sm:$0xff]  }
  0x22   :  { %295 = vmatprep.mubr.bf16.mxu0 %v363_v16  ;;  %335 = vmatprep.mubr.bf16.mxu1 %v365_v17  ;;  %v433_v24 = vld [vmem:[#allocation5 + $0x44] ss:$16 sps:$4 sm:$0xff]   ;;  %v435_v25 = vld [vmem:[#allocation5 + $0x4c] ss:$16 sps:$4 sm:$0xff]   ;;  %v437_v26 = vld [vmem:[#allocation5 + $0x40] ss:$16 sps:$4 sm:$0xff]  }
  0x23   :  { %v438_v27 = vld [vmem:[#allocation5 + $0x48] ss:$16 sps:$4 sm:$0xff]   ;;  %v439_v28 = vld [vmem:[#allocation5 + $0x24] ss:$16 sps:$4 sm:$0xff]   ;;  %v441_v29 = vld [vmem:[#allocation5 + $0x2c] ss:$16 sps:$4 sm:$0xff]  }
  0x24   :  { %266 = vmatpush1.bf16.xpose.msra.mxu0 %v413_v6  ;;  %306 = vmatpush1.bf16.xpose.msra.mxu1 %v414_v7  ;;  %v443_v30 = vld [vmem:[#allocation5 + $0x20] ss:$16 sps:$4 sm:$0xff]   ;;  %v444_v31 = vld [vmem:[#allocation5 + $0x28] ss:$16 sps:$4 sm:$0xff]   ;;  %v445_v32 = vld [vmem:[#allocation5 + $0x4] ss:$16 sps:$4 sm:$0xff]  }
  0x25   :  { %267 = vmatprep.subr.bf16.mxu0 %v415_v8  ;;  %307 = vmatprep.subr.bf16.mxu1 %v417_v9  ;;  %v447_v33 = vld [vmem:[#allocation5 + $0xc] ss:$16 sps:$4 sm:$0xff]   ;;  %v449_v34 = vld [vmem:[#allocation5] ss:$16 sps:$4 sm:$0xff]   ;;  %v450_v35 = vld [vmem:[#allocation5 + $0x8] ss:$16 sps:$4 sm:$0xff]  }
  0x26   :  { %v361_v39 = vld [vmem:[%s560_s2] ss:$0 sm:$0xff]  ;;  %s351_s25 = sshll.u32 %s525_s24, 4  ;;  %s352_s25 = int_to_ptr.vmem [resolvable:$true] %s351_s25 }
  0x27   :  { %s495_s26 = scalar_lea.vmem %s352_s25, 128  ;;  %p500_p11 = scmp.lt.s32.totalorder %s352_s25, %s352_s25 }
  0x28   :  { %p496_p10 = scmp.ne.s32.totalorder %s352_s25, %s495_s26  ;;  %p501_p12 = scmp.lt.s32.totalorder %s495_s26, %s495_s26 }
  0x2a   :  { %p502_p13 = por %p501_p12, %p500_p11 }
  0x2c   :  { %268 = vmatpush1.bf16.xpose.msra.mxu0 %v419_v10  ;;  %308 = vmatpush1.bf16.xpose.msra.mxu1 %v420_v11  ;;  %p503_p0 = pnand %p502_p13, %p496_p10 }
  0x2d   :  { %269 = vmatprep.subr.bf16.mxu0 %v421_v12  ;;  %309 = vmatprep.subr.bf16.mxu1 %v423_v13 }
  0x34   :  { %270 = vmatpush1.bf16.xpose.msra.mxu0 %v425_v18  ;;  %310 = vmatpush1.bf16.xpose.msra.mxu1 %v426_v19 }
  0x35   :  { %271 = vmatprep.subr.bf16.mxu0 %v427_v20  ;;  %311 = vmatprep.subr.bf16.mxu1 %v429_v21 }
  0x3c   :  { %272 = vmatpush1.bf16.xpose.msra.mxu0 %v431_v22  ;;  %312 = vmatpush1.bf16.xpose.msra.mxu1 %v432_v23 }
  0x3d   :  { %273 = vmatprep.subr.bf16.mxu0 %v433_v24  ;;  %313 = vmatprep.subr.bf16.mxu1 %v435_v25 }
  0x44   :  { %274 = vmatpush1.bf16.xpose.msra.mxu0 %v437_v26  ;;  %314 = vmatpush1.bf16.xpose.msra.mxu1 %v438_v27 }
  0x45   :  { %275 = vmatprep.subr.bf16.mxu0 %v439_v28  ;;  %315 = vmatprep.subr.bf16.mxu1 %v441_v29 }
  0x4c   :  { %276 = vmatpush1.bf16.xpose.msra.mxu0 %v443_v30  ;;  %316 = vmatpush1.bf16.xpose.msra.mxu1 %v444_v31 }
  0x4d   :  { %277 = vmatprep.subr.bf16.mxu0 %v445_v32  ;;  %317 = vmatprep.subr.bf16.mxu1 %v447_v33 }
  0x54   :  { %278 = vmatpush1.bf16.xpose.msra.mxu0 %v449_v34  ;;  %318 = vmatpush1.bf16.xpose.msra.mxu1 %v450_v35 }
  0x5b   :  { %296 = vmatmul.mubr.bf16.vlgmr.msra.gmra.mxu0 %v362_v36  ;;  %336 = vmatmul.mubr.bf16.vlgmr.msra.gmra.mxu1 %v364_v37 }
 0x11b   :  { %v297_v38 = vpop.f32.mrf.mxu0  ;;  %v337_v40 = vpop.f32.mrf.mxu1 }
 0x11c   :  { %v338_v41 = vadd.f32 %v337_v40, %v297_v38 }
 0x11d   :  { %v299_v42 = vpop.f32.mrf.mxu0  ;;  %v339_v43 = vpop.f32.mrf.mxu1 }
 0x11e   :  { %v343_v44 = vadd.f32 %v361_v39, %v338_v41 }
 0x11f   :  { %v300_v45 = vpop.f32.mrf.mxu0  ;;  %v340_v46 = vpop.f32.mrf.mxu1 }
 0x120   :  { %344 = vst [vmem:[#allocation7] sm:$0xff] %v343_v44 }
 0x121   :  { %v301_v47 = vpop.f32.mrf.mxu0  ;;  %v341_v48 = vpop.f32.mrf.mxu1 }
 0x122   :  { %506 = shalt.err (!%p503_p0)
}
 0x123   :  { %354 = dma.vmem_to_hbm [thread:$0]  %s352_s25, 128, %s561_s3, [#allocation4]  }
 0x124   :  { %519 = dma.done.wait [#allocation4], 128  }
 0x125   :  { %520 = vsyncadd [#allocation4], 4294967168 }
 0x126   :  { %358 = vsyncpa [#allocation3], 1 }
 0x127   :  { %359 = vsyncpa [#allocation6], 1 }
 0x128   :  { %360 = vsyncpa [#allocation4], 1 }

</bundles_post_ra>
